<compile_context>
chip_gen: v6e
topology: v6e:2x2x1
jax: 0.10.0
libtpu: 0.0.40
codegen_flags: <defaults>
</compile_context>

<pallas_src>
import functools

import jax
import jax.numpy as jnp
from jax.experimental import pallas as pl
from jax.experimental.pallas import tpu as pltpu


# ---------------- kernel ---------------------------------------------------------
def channel_attention_kernel(x_ref, w1_ref, b1_ref, w2_ref, b2_ref, o_ref, *, inv_hw):
    # x_ref:  (1, C, HW)   lane-dense activation tile (HW on lanes, C on sublanes)
    # w1_ref: (C, Cs)      squeeze FC weight, stored transposed (channel on sublanes)
    # b1_ref: (1, Cs)
    # w2_ref: (C, Cs)      excite FC weight in native PyTorch (O, I) layout
    # b2_ref: (C, 1)
    x = x_ref[0]                                                   # (C, HW)

    # AdaptiveAvgPool2d(1): mean over the spatial (lane) axis -> (C, 1).
    pooled = jnp.sum(x, axis=1, keepdims=True) * inv_hw            # (C, 1)

    # Squeeze 1x1 conv + ReLU.  Tiny (C x Cs) contraction -> VPU broadcast-mul
    # + cross-sublane reduce instead of a degenerate MXU matmul.
    y1 = jnp.sum(w1_ref[...] * pooled, axis=0, keepdims=True) + b1_ref[...]   # (1, Cs)
    y1 = jnp.maximum(y1, 0.0)

    # Excite 1x1 conv + Sigmoid.
    z = jnp.sum(w2_ref[...] * y1, axis=1, keepdims=True) + b2_ref[...]        # (C, 1)
    # sigmoid(z) = 1 / (1 + exp(-z)); exp on EUP, approx reciprocal on EUP too.
    gate = pl.reciprocal(1.0 + jnp.exp(-z), approx=True)                      # (C, 1)

    # Gate the input: broadcast per-channel scale over all HW lanes.
    o_ref[0] = x * gate


# ---------------- wrapper --------------------------------------------------------
def channel_attention(x_nchw, w1, b1, w2, b2):
    """x: (N, C, H, W) f32; w1: (Cs, C, 1, 1); b1: (Cs,); w2: (C, Cs, 1, 1); b2: (C,)."""
    N, C, H, W = x_nchw.shape
    Cs = w1.shape[0]
    HW = H * W

    # NCHW with spatial flattened is already the lane-dense (N, C, HW) layout.
    x = x_nchw.reshape(N, C, HW).astype(jnp.float32)
    w1_t = w1.reshape(Cs, C).T.astype(jnp.float32)       # (C, Cs): channel on sublanes
    b1_r = b1.reshape(1, Cs).astype(jnp.float32)
    w2_m = w2.reshape(C, Cs).astype(jnp.float32)         # (C, Cs): native OI layout
    b2_c = b2.reshape(C, 1).astype(jnp.float32)

    # TODO(synk): for large resolutions, tile HW on a second grid axis with a
    # two-pass (pool-accumulate, then gate) scheme sized for 64 MiB VMEM on v7x.
    out = pl.pallas_call(
        functools.partial(channel_attention_kernel, inv_hw=1.0 / HW),
        out_shape=jax.ShapeDtypeStruct((N, C, HW), jnp.float32),
        grid=(N,),
        in_specs=[
            pl.BlockSpec((1, C, HW), lambda n: (n, 0, 0)),
            pl.BlockSpec((C, Cs), lambda n: (0, 0)),
            pl.BlockSpec((1, Cs), lambda n: (0, 0)),
            pl.BlockSpec((C, Cs), lambda n: (0, 0)),
            pl.BlockSpec((C, 1), lambda n: (0, 0)),
        ],
        out_specs=pl.BlockSpec((1, C, HW), lambda n: (n, 0, 0)),
        compiler_params=pltpu.CompilerParams(
            dimension_semantics=("parallel",)),     # v7x: shard batch over both TCs
    )(x, w1_t, b1_r, w2_m, b2_c)
    return out.reshape(N, C, H, W)


# ---------------- pure-JAX reference (for correctness check) ---------------------
def channel_attention_ref(x, w1, b1, w2, b2):
    N, C, H, W = x.shape
    Cs = w1.shape[0]
    y = jnp.mean(x, axis=(2, 3))                                    # (N, C)
    y = jnp.maximum(y @ w1.reshape(Cs, C).T + b1, 0.0)              # (N, Cs)
    y = jax.nn.sigmoid(y @ w2.reshape(C, Cs).T + b2)                # (N, C)
    return x * y[:, :, None, None]


# ---------------- main -----------------------------------------------------------
if __name__ == "__main__":
    key = jax.random.PRNGKey(0)
    kx, k1, k2, k3, k4 = jax.random.split(key, 5)

    N, C, H, W = 2, 64, 16, 16          # num_feat=64, squeeze_factor=16 (module defaults)
    SQ = 16
    Cs = C // SQ

    x = jax.random.uniform(kx, (N, C, H, W), jnp.float32)
    w1 = 0.1 * jax.random.normal(k1, (Cs, C, 1, 1), jnp.float32)
    b1 = 0.01 * jax.random.normal(k2, (Cs,), jnp.float32)
    w2 = 0.1 * jax.random.normal(k3, (C, Cs, 1, 1), jnp.float32)
    b2 = 0.01 * jax.random.normal(k4, (C,), jnp.float32)

    y = jax.jit(channel_attention)(x, w1, b1, w2, b2)
    jax.block_until_ready(y)

    assert y.shape == (N, C, H, W), y.shape
    assert y.dtype == jnp.float32

    y_ref = channel_attention_ref(x, w1, b1, w2, b2)
    max_err = float(jnp.max(jnp.abs(y - y_ref)))
    # Loose tolerance only because of pl.reciprocal(approx=True) in the sigmoid.
    assert max_err < 1e-2, max_err

    print("KERNEL_OK")
</pallas_src>

<mosaic_0001>
module attributes {stable_mosaic.version = 11 : i64} {
  func.func @channel_attention_kernel(%arg0: i32, %arg1: memref<1x64x256xf32, #tpu.memory_space<vmem>>, %arg2: memref<64x4xf32, #tpu.memory_space<vmem>>, %arg3: memref<1x4xf32, #tpu.memory_space<vmem>>, %arg4: memref<64x4xf32, #tpu.memory_space<vmem>>, %arg5: memref<64x1xf32, #tpu.memory_space<vmem>>, %arg6: memref<1x64x256xf32, #tpu.memory_space<vmem>>) attributes {dimension_semantics = [#tpu.dimension_semantics<parallel>], iteration_bounds = array<i64: 2>, scalar_prefetch = 0 : i64, scratch_operands = 0 : i64, tpu.core_type = #tpu.core_type<tc>, window_params = [{transform_indices = @transform_0, window_bounds = array<i64: 1, 64, 256>}, {pipeline_mode = #tpu.pipeline_mode<synchronous>, transform_indices = @transform_1, window_bounds = array<i64: 64, 4>}, {pipeline_mode = #tpu.pipeline_mode<synchronous>, transform_indices = @transform_2, window_bounds = array<i64: 1, 4>}, {pipeline_mode = #tpu.pipeline_mode<synchronous>, transform_indices = @transform_3, window_bounds = array<i64: 64, 4>}, {pipeline_mode = #tpu.pipeline_mode<synchronous>, transform_indices = @transform_4, window_bounds = array<i64: 64, 1>}, {transform_indices = @transform_5, window_bounds = array<i64: 1, 64, 256>}]} {
    %c0 = arith.constant 0 : index
    %c0_0 = arith.constant 0 : index
    %c0_1 = arith.constant 0 : index
    %0 = vector.load %arg1[%c0, %c0_0, %c0_1] : memref<1x64x256xf32, #tpu.memory_space<vmem>>, vector<1x64x256xf32>
    %1 = vector.shape_cast %0 : vector<1x64x256xf32> to vector<64x256xf32>
    %cst = arith.constant dense<0.000000e+00> : vector<64xf32>
    %2 = vector.multi_reduction <add>, %1, %cst [1] : vector<64x256xf32> to vector<64xf32>
    %3 = vector.shape_cast %2 : vector<64xf32> to vector<64x1xf32>
    %cst_2 = arith.constant 3.906250e-03 : f32
    %4 = vector.broadcast %cst_2 : f32 to vector<64x1xf32>
    %5 = arith.mulf %3, %4 : vector<64x1xf32>
    %c0_3 = arith.constant 0 : index
    %c0_4 = arith.constant 0 : index
    %6 = vector.load %arg2[%c0_3, %c0_4] : memref<64x4xf32, #tpu.memory_space<vmem>>, vector<64x4xf32>
    %7 = vector.broadcast %5 : vector<64x1xf32> to vector<64x4xf32>
    %8 = arith.mulf %6, %7 : vector<64x4xf32>
    %cst_5 = arith.constant dense<0.000000e+00> : vector<4xf32>
    %9 = vector.multi_reduction <add>, %8, %cst_5 [0] : vector<64x4xf32> to vector<4xf32>
    %10 = vector.shape_cast %9 : vector<4xf32> to vector<1x4xf32>
    %c0_6 = arith.constant 0 : index
    %c0_7 = arith.constant 0 : index
    %11 = vector.load %arg3[%c0_6, %c0_7] : memref<1x4xf32, #tpu.memory_space<vmem>>, vector<1x4xf32>
    %12 = arith.addf %10, %11 : vector<1x4xf32>
    %cst_8 = arith.constant 0.000000e+00 : f32
    %13 = vector.broadcast %cst_8 : f32 to vector<1x4xf32>
    %14 = arith.maximumf %12, %13 : vector<1x4xf32>
    %c0_9 = arith.constant 0 : index
    %c0_10 = arith.constant 0 : index
    %15 = vector.load %arg4[%c0_9, %c0_10] : memref<64x4xf32, #tpu.memory_space<vmem>>, vector<64x4xf32>
    %16 = vector.broadcast %14 : vector<1x4xf32> to vector<64x4xf32>
    %17 = arith.mulf %15, %16 : vector<64x4xf32>
    %cst_11 = arith.constant dense<0.000000e+00> : vector<64xf32>
    %18 = vector.multi_reduction <add>, %17, %cst_11 [1] : vector<64x4xf32> to vector<64xf32>
    %19 = vector.shape_cast %18 : vector<64xf32> to vector<64x1xf32>
    %c0_12 = arith.constant 0 : index
    %c0_13 = arith.constant 0 : index
    %20 = vector.load %arg5[%c0_12, %c0_13] : memref<64x1xf32, #tpu.memory_space<vmem>>, vector<64x1xf32>
    %21 = arith.addf %19, %20 : vector<64x1xf32>
    %cst_14 = arith.constant 0.000000e+00 : f32
    %22 = vector.broadcast %cst_14 : f32 to vector<64x1xf32>
    %23 = arith.subf %22, %21 : vector<64x1xf32>
    %24 = math.exp %23 : vector<64x1xf32>
    %cst_15 = arith.constant 1.000000e+00 : f32
    %25 = vector.broadcast %cst_15 : f32 to vector<64x1xf32>
    %26 = arith.addf %25, %24 : vector<64x1xf32>
    %27 = tpu.reciprocal %26 {approx = true} : vector<64x1xf32> -> vector<64x1xf32>
    %28 = vector.broadcast %27 : vector<64x1xf32> to vector<64x256xf32>
    %29 = arith.mulf %1, %28 : vector<64x256xf32>
    %c0_16 = arith.constant 0 : index
    %c0_17 = arith.constant 0 : index
    %c0_18 = arith.constant 0 : index
    %30 = vector.load %arg6[%c0_16, %c0_17, %c0_18] : memref<1x64x256xf32, #tpu.memory_space<vmem>>, vector<1x64x256xf32>
    %31 = vector.shape_cast %30 : vector<1x64x256xf32> to vector<64x256xf32>
    %32 = vector.shape_cast %29 : vector<64x256xf32> to vector<1x64x256xf32>
    tpu.vector_store %arg6[%c0_16, %c0_17, %c0_18], %32 {strides = array<i32>} : memref<1x64x256xf32, #tpu.memory_space<vmem>>, vector<1x64x256xf32>,
    return
  }
  func.func @transform_0(%arg0: i32) -> (i32, i32, i32) {
    %c0_i32 = arith.constant 0 : i32
    %c0_i32_0 = arith.constant 0 : i32
    %c0_i32_1 = arith.constant 0 : i32
    return %arg0, %c0_i32, %c0_i32_0 : i32, i32, i32
  }
  func.func @transform_1(%arg0: i32) -> (i32, i32) {
    %c0_i32 = arith.constant 0 : i32
    %c0_i32_0 = arith.constant 0 : i32
    %c0_i32_1 = arith.constant 0 : i32
    return %c0_i32, %c0_i32_0 : i32, i32
  }
  func.func @transform_2(%arg0: i32) -> (i32, i32) {
    %c0_i32 = arith.constant 0 : i32
    %c0_i32_0 = arith.constant 0 : i32
    %c0_i32_1 = arith.constant 0 : i32
    return %c0_i32, %c0_i32_0 : i32, i32
  }
  func.func @transform_3(%arg0: i32) -> (i32, i32) {
    %c0_i32 = arith.constant 0 : i32
    %c0_i32_0 = arith.constant 0 : i32
    %c0_i32_1 = arith.constant 0 : i32
    return %c0_i32, %c0_i32_0 : i32, i32
  }
  func.func @transform_4(%arg0: i32) -> (i32, i32) {
    %c0_i32 = arith.constant 0 : i32
    %c0_i32_0 = arith.constant 0 : i32
    %c0_i32_1 = arith.constant 0 : i32
    return %c0_i32, %c0_i32_0 : i32, i32
  }
  func.func @transform_5(%arg0: i32) -> (i32, i32, i32) {
    %c0_i32 = arith.constant 0 : i32
    %c0_i32_0 = arith.constant 0 : i32
    %c0_i32_1 = arith.constant 0 : i32
    return %arg0, %c0_i32, %c0_i32_0 : i32, i32, i32
  }
}

</mosaic_0001>

<bundles_post_ra>
// kernel: channel_attention.1
= control target key start
LH: loop header
LB: loop body
LE: loop exit
PB: predicated region body
PF: predicated region fallthrough
CT: control target
= control target key end

     0   :  { %s636_s18 = smov 0   ;;  %s833_s0 = inlined_call_operand.vmem [shape: f32[2,64,256], index: 0, kind: input, shape index: {}]   ;;  %s834_s1 = inlined_call_operand.vmem [shape: f32[64,4], index: 1, kind: input, shape index: {}]   ;;  %s835_s2 = inlined_call_operand.vmem [shape: f32[1,4], index: 2, kind: input, shape index: {}]   ;;  %s836_s3 = inlined_call_operand.vmem [shape: f32[64,4], index: 3, kind: input, shape index: {}]   ;;  %s837_s4 = inlined_call_operand.vmem [shape: f32[64,1], index: 4, kind: input, shape index: {}]   ;;  %s838_s5 = inlined_call_operand.vmem [shape: f32[2,64,256], index: 5, kind: output, shape index: {}]  }
   0x1 LB: > { %s541_s19 = sadd.s32 4294967295, %s603_s18   ;;  %p545_p0 = scmp.ge.s32.totalorder %s603_s18, 1  ;;  %s603_s18 = sphi %s636_s18, %s15_s18  }
   0x2   : > { %p187_p1 = scmp.lt.s32.totalorder %s603_s18, 3 }
   0x4   : > { %p188_p2 = pnand %p545_p0, %p187_p1 }
   0x5   : > { %p215_p3 = scmp.lt.s32.totalorder (!%p188_p2), %s541_s19, 1 }
   0x6   : > { %191 = sbr.rel (%p188_p2) target bundleno = 525 (0x20d), region = 40 }
   0xb   : > { %s840_s19 = smov (!%p215_p3, %s541_s19), 1  ;;  %v273_v27 = vld [vmem:[%s834_s1] sm:$0xff]  ;;  %v275_v29 = vld [vmem:[%s834_s1 + $0x10] sm:$0xff]  ;;  %v274_v30 = vld [vmem:[%s834_s1 + $0x8] sm:$0xff]  ;;  %vm289_vm0 = vcmask 31744  }
   0xc   : > { %s552_s20 = sshll.u32 %s840_s19, 7  ;;  %v276_v34 = vld [vmem:[%s834_s1 + $0x18] sm:$0xff]  ;;  %v277_v40 = vld [vmem:[%s834_s1 + $0x20] sm:$0xff]  ;;  %v278_v45 = vld [vmem:[%s834_s1 + $0x28] sm:$0xff] }
   0xd   : > { %s219_s23 = scalar_lea.vmem %s833_s0, %s552_s20  ;;  %v279_v54 = vld [vmem:[%s834_s1 + $0x30] sm:$0xff]  ;;  %v280_v58 = vld [vmem:[%s834_s1 + $0x38] sm:$0xff]  ;;  %s796_s7 = scalar_lea.vmem %s838_s5, %s552_s20 }
   0xe   : > { %v652_v0 = vld [vmem:[%s219_s23] sm:$0xff]  ;;  %v654_v1 = vld [vmem:[%s219_s23 + $0x8] sm:$0xff]  ;;  %v662_v5 = vld [vmem:[%s219_s23 + $0x10] sm:$0xff] }
   0xf   : > { %v656_v2 = vld [vmem:[%s219_s23 + $0x20] sm:$0xff]  ;;  %v241_v3 = vadd.f32 %v654_v1, %v652_v0  ;;  %v660_v4 = vld [vmem:[%s219_s23 + $0x28] sm:$0xff]  ;;  %v664_v6 = vld [vmem:[%s219_s23 + $0x18] sm:$0xff] }
  0x10   : > { %v247_v7 = vadd.f32 %v660_v4, %v656_v2  ;;  %v668_v8 = vld [vmem:[%s219_s23 + $0x30] sm:$0xff]  ;;  %v670_v9 = vld [vmem:[%s219_s23 + $0x38] sm:$0xff]  ;;  %v244_v10 = vadd.f32 %v664_v6, %v662_v5  ;;  %v676_v12 = vld [vmem:[%s219_s23 + $0x40] sm:$0xff] }
  0x11   : > { %242 = vadd.xlane.f32.xlu0 %v241_v3  ;;  %v250_v11 = vadd.f32 %v670_v9, %v668_v8  ;;  %v678_v13 = vld [vmem:[%s219_s23 + $0x48] sm:$0xff]  ;;  %v680_v14 = vld [vmem:[%s219_s23 + $0x50] sm:$0xff]  ;;  %v682_v15 = vld [vmem:[%s219_s23 + $0x58] sm:$0xff] }
  0x12   : > { %248 = vadd.xlane.f32.xlu1 %v247_v7  ;;  %v253_v16 = vadd.f32 %v678_v13, %v676_v12  ;;  %v256_v17 = vadd.f32 %v682_v15, %v680_v14  ;;  %v688_v18 = vld [vmem:[%s219_s23 + $0x60] sm:$0xff]  ;;  %v690_v19 = vld [vmem:[%s219_s23 + $0x68] sm:$0xff]  ;;  %v692_v20 = vld [vmem:[%s219_s23 + $0x70] sm:$0xff] }
  0x13   : > { %v694_v21 = vld [vmem:[%s219_s23 + $0x78] sm:$0xff]  ;;  %v259_v22 = vadd.f32 %v690_v19, %v688_v18 }
  0x14   : > { %v262_v23 = vadd.f32 %v694_v21, %v692_v20 }
  0x15   : > { %245 = vadd.xlane.f32.xlu0 %v244_v10 }
  0x16   : > { %251 = vadd.xlane.f32.xlu1 %v250_v11 }
  0x19   : > { %254 = vadd.xlane.f32.xlu0 %v253_v16 }
  0x1a   : > { %257 = vadd.xlane.f32.xlu1 %v256_v17 }
  0x1d   : > { %260 = vadd.xlane.f32.xlu0 %v259_v22 }
  0x1e   : > { %263 = vadd.xlane.f32.xlu1 %v262_v23 }
  0x9a   : > { %v243_v24 = vpop.xlane.xlu0 %242 }
  0x9b   : > { %v265_v25 = vmul.f32 0.00390625, %v243_v24  ;;  %v249_v26 = vpop.xlane.xlu1 %248 }
  0x9c   : > { %v267_v28 = vmul.f32 0.00390625, %v249_v26 }
  0x9d   : > { %v281_v32 = vmul.f32 %v273_v27, %v265_v25  ;;  %v322_v25 = vlaneseq }
  0x9e   : > { %v246_v31 = vpop.xlane.xlu0 %245  ;;  %v283_v37 = vmul.f32 %v275_v29, %v267_v28 }
  0x9f   : > { %v266_v33 = vmul.f32 0.00390625, %v246_v31  ;;  %v252_v35 = vpop.xlane.xlu1 %251  ;;  %v290_v42 = vsel %vm289_vm0, %v281_v32, 0.0  ;;  %v323_v28 = vshrl.u32 %v322_v25, 7 }
  0xa0   : > { %v268_v36 = vmul.f32 0.00390625, %v252_v35  ;;  %v293_v49 = vsel %vm289_vm0, %v283_v37, 0.0  ;;  %v315_v35 = vld [vmem:[%s836_s3 + $0x8] sm:$0xff] }
  0xa1   : > { %v282_v38 = vmul.f32 %v274_v30, %v266_v33  ;;  %v311_v30 = vld [vmem:[%s835_s2] sm:$0x1]  ;;  %v324_v32 = vsub.s32 0, %v323_v28 }
  0xa2   : > { %v284_v39 = vmul.f32 %v276_v34, %v268_v36  ;;  %v255_v41 = vpop.xlane.xlu0 %254  ;;  %v314_v36 = vld [vmem:[%s836_s3] sm:$0xff] }
  0xa3   : > { %v291_v43 = vsel %vm289_vm0, %v282_v38, 0.0  ;;  %v269_v44 = vmul.f32 0.00390625, %v255_v41  ;;  %v258_v46 = vpop.xlane.xlu1 %257  ;;  %v317_v38 = vld [vmem:[%s836_s3 + $0x18] sm:$0xff] }
  0xa4   : > { %v292_v47 = vadd.f32 %v291_v43, %v290_v42  ;;  %v270_v48 = vmul.f32 0.00390625, %v258_v46  ;;  %v295_v50 = vsel %vm289_vm0, %v284_v39, 0.0  ;;  %v316_v39 = vld [vmem:[%s836_s3 + $0x10] sm:$0xff]  ;;  %v319_v46 = vld [vmem:[%s836_s3 + $0x28] sm:$0xff] }
  0xa5   : > { %v285_v51 = vmul.f32 %v277_v40, %v269_v44 }
  0xa6   : > { %v294_v52 = vadd.f32 %v293_v49, %v292_v47  ;;  %v286_v53 = vmul.f32 %v278_v45, %v270_v48  ;;  %v261_v55 = vpop.xlane.xlu0 %260  ;;  %v318_v47 = vld [vmem:[%s836_s3 + $0x20] sm:$0xff] }
  0xa7   : > { %v297_v56 = vsel %vm289_vm0, %v285_v51, 0.0  ;;  %v271_v57 = vmul.f32 0.00390625, %v261_v55  ;;  %v264_v59 = vpop.xlane.xlu1 %263 }
  0xa8   : > { %v296_v60 = vadd.f32 %v295_v50, %v294_v52  ;;  %v272_v61 = vmul.f32 0.00390625, %v264_v59  ;;  %v299_v62 = vsel %vm289_vm0, %v286_v53, 0.0  ;;  %v321_v52 = vld [vmem:[%s836_s3 + $0x38] sm:$0xff]  ;;  %v320_v53 = vld [vmem:[%s836_s3 + $0x30] sm:$0xff] }
  0xa9   : > { %v287_v63 = vmul.f32 %v279_v54, %v271_v57 }
  0xaa   : > { %v298_v3 = vadd.f32 %v297_v56, %v296_v60  ;;  %v288_v7 = vmul.f32 %v280_v58, %v272_v61  ;;  %v605_v60 = vmov 0   ;;  %v359_v61 = vld [vmem:[%s837_s4 + $0x8] sm:$0xff] }
  0xab   : > { %v301_v10 = vsel %vm289_vm0, %v287_v63, 0.0  ;;  %564 = vset.pattern.permute.xlu1 %v605_v60  ;;  %563 = vset.pattern.permute.xlu0 %v605_v60 }
  0xac   : > { %v300_v11 = vadd.f32 %v299_v62, %v298_v3  ;;  %v303_v16 = vsel %vm289_vm0, %v288_v7, 0.0  ;;  %v358_v62 = vld [vmem:[%s837_s4] sm:$0xff] }
  0xae   : > { %v302_v17 = vadd.f32 %v301_v10, %v300_v11  ;;  %v361_v11 = vld [vmem:[%s837_s4 + $0x18] sm:$0xff] }
  0xb0   : > { %v304_v22 = vadd.f32 %v303_v16, %v302_v17  ;;  %v360_v16 = vld [vmem:[%s837_s4 + $0x10] sm:$0xff] }
  0xb2   : > { %v305_v23 = vrot.slane %v304_v22, 4 }
  0xb4   : > { %v306_v24 = vadd.f32 %v305_v23, %v304_v22 }
  0xb6   : > { %v307_v26 = vrot.slane %v306_v24, 2 }
  0xb8   : > { %v308_v27 = vadd.f32 %v307_v26, %v306_v24 }
  0xba   : > { %v309_v29 = vrot.slane %v308_v27, 1 }
  0xbc   : > { %v310_v31 = vadd.f32 %v309_v29, %v308_v27  ;;  %v363_v29 = vld [vmem:[%s837_s4 + $0x28] sm:$0xff] }
  0xbe   : > { %v312_v33 = vadd.f32 %v311_v30, %v310_v31  ;;  %v362_v30 = vld [vmem:[%s837_s4 + $0x20] sm:$0xff] }
  0xc0   : > { %v313_v34 = vmax.f32 %v312_v33, 0.0 }
  0xc2   : > { %v325_v37 = vrot.slane %v313_v34, %v324_v32 }
  0xc4   : > { %v327_v40 = vmul.f32 %v325_v37, %v315_v35  ;;  %v326_v41 = vmul.f32 %v325_v37, %v314_v36  ;;  %v329_v44 = vmul.f32 %v325_v37, %v317_v38  ;;  %v328_v45 = vmul.f32 %v325_v37, %v316_v39  ;;  %v364_v39 = vld [vmem:[%s837_s4 + $0x30] sm:$0xff] }
  0xc5   : > { %v331_v50 = vmul.f32 %v325_v37, %v319_v46  ;;  %v330_v51 = vmul.f32 %v325_v37, %v318_v47  ;;  %v333_v56 = vmul.f32 %v325_v37, %v321_v52  ;;  %v332_v57 = vmul.f32 %v325_v37, %v320_v53 }
  0xc6   : > { %v337_v42 = vsel %vm289_vm0, %v327_v40, 0.0  ;;  %v334_v43 = vsel %vm289_vm0, %v326_v41, 0.0  ;;  %v343_v48 = vsel %vm289_vm0, %v329_v44, 0.0  ;;  %v340_v49 = vsel %vm289_vm0, %v328_v45, 0.0 }
  0xc7   : > { %338 = vadd.xlane.f32.xlu1 %v337_v42  ;;  %335 = vadd.xlane.f32.xlu0 %v334_v43  ;;  %v349_v54 = vsel %vm289_vm0, %v331_v50, 0.0  ;;  %v346_v55 = vsel %vm289_vm0, %v330_v51, 0.0  ;;  %v355_v58 = vsel %vm289_vm0, %v333_v56, 0.0  ;;  %v352_v59 = vsel %vm289_vm0, %v332_v57, 0.0  ;;  %v365_v42 = vld [vmem:[%s837_s4 + $0x38] sm:$0xff] }
  0xcb   : > { %344 = vadd.xlane.f32.xlu1 %v343_v48  ;;  %341 = vadd.xlane.f32.xlu0 %v340_v49 }
  0xcf   : > { %350 = vadd.xlane.f32.xlu1 %v349_v54  ;;  %347 = vadd.xlane.f32.xlu0 %v346_v55 }
  0xd3   : > { %356 = vadd.xlane.f32.xlu1 %v355_v58  ;;  %353 = vadd.xlane.f32.xlu0 %v352_v59 }
 0x150   : > { %v339_v63 = vpop.xlane.xlu1 %338  ;;  %v336_v3 = vpop.xlane.xlu0 %335 }
 0x151   : > { %v367_v7 = vadd.f32 %v359_v61, %v339_v63  ;;  %v366_v10 = vadd.f32 %v358_v62, %v336_v3 }
 0x153   : > { %v375_v17 = vsub.f32 0.0, %v367_v7  ;;  %v374_v22 = vsub.f32 0.0, %v366_v10 }
 0x154   : > { %v345_v23 = vpop.xlane.xlu1 %344  ;;  %v342_v24 = vpop.xlane.xlu0 %341 }
 0x155   : > { %v384_v25 = vmul.f32 1.442695, %v375_v17  ;;  %v382_v26 = vmul.f32 1.442695, %v374_v22  ;;  %v369_v27 = vadd.f32 %v361_v11, %v345_v23  ;;  %v368_v28 = vadd.f32 %v360_v16, %v342_v24 }
 0x157   : > { %565 = vpow2.f32 %v384_v25  ;;  %v377_v31 = vsub.f32 0.0, %v369_v27  ;;  %v376_v32 = vsub.f32 0.0, %v368_v28 }
 0x158   : > { %567 = vpow2.f32 %v382_v26  ;;  %v351_v33 = vpop.xlane.xlu1 %350  ;;  %v348_v34 = vpop.xlane.xlu0 %347 }
 0x159   : > { %v388_v35 = vmul.f32 1.442695, %v377_v31  ;;  %v386_v36 = vmul.f32 1.442695, %v376_v32  ;;  %v371_v37 = vadd.f32 %v363_v29, %v351_v33  ;;  %v370_v38 = vadd.f32 %v362_v30, %v348_v34 }
 0x15b   : > { %569 = vpow2.f32 %v388_v35  ;;  %v378_v40 = vsub.f32 0.0, %v370_v38  ;;  %v379_v41 = vsub.f32 0.0, %v371_v37 }
 0x15c   : > { %571 = vpow2.f32 %v386_v36  ;;  %v357_v43 = vpop.xlane.xlu1 %356  ;;  %v354_v44 = vpop.xlane.xlu0 %353 }
 0x15d   : > { %v390_v45 = vmul.f32 1.442695, %v378_v40  ;;  %v372_v46 = vadd.f32 %v364_v39, %v354_v44  ;;  %v373_v47 = vadd.f32 %v365_v42, %v357_v43  ;;  %v392_v49 = vmul.f32 1.442695, %v379_v41 }
 0x15f   : > { %v380_v48 = vsub.f32 0.0, %v372_v46  ;;  %573 = vpow2.f32 %v390_v45  ;;  %v381_v51 = vsub.f32 0.0, %v373_v47 }
 0x160   : > { %575 = vpow2.f32 %v392_v49 }
 0x161   : > { %v394_v50 = vmul.f32 1.442695, %v380_v48  ;;  %v396_v56 = vmul.f32 1.442695, %v381_v51 }
 0x163   : > { %577 = vpow2.f32 %v394_v50 }
 0x164   : > { %v566_v52 = vpop.eup %565 }
 0x165   : > { %v568_v53 = vpop.eup %567  ;;  %v399_v54 = vadd.f32 1.0, %v566_v52 }
 0x166   : > { %v398_v55 = vadd.f32 1.0, %v568_v53 }
 0x167   : > { %579 = vrcp.f32 %v399_v54 }
 0x168   : > { %v570_v57 = vpop.eup %569  ;;  %581 = vrcp.f32 %v398_v55 }
 0x169   : > { %v572_v58 = vpop.eup %571  ;;  %583 = vpow2.f32 %v396_v56  ;;  %v401_v60 = vadd.f32 1.0, %v570_v57 }
 0x16a   : > { %v400_v59 = vadd.f32 1.0, %v572_v58 }
 0x16c   : > { %585 = vrcp.f32 %v400_v59  ;;  %v574_v61 = vpop.eup %573 }
 0x16d   : > { %587 = vrcp.f32 %v401_v60  ;;  %v402_v62 = vadd.f32 1.0, %v574_v61  ;;  %v576_v63 = vpop.eup %575 }
 0x16e   : > { %v403_v10 = vadd.f32 1.0, %v576_v63 }
 0x16f   : > { %589 = vrcp.f32 %v402_v62 }
 0x170   : > { %v578_v3 = vpop.eup %577  ;;  %591 = vrcp.f32 %v403_v10 }
 0x171   : > { %v404_v17 = vadd.f32 1.0, %v578_v3 }
 0x173   : > { %593 = vrcp.f32 %v404_v17 }
 0x174   : > { %v580_v7 = vpop.eup %579 }
 0x175   : > { %v582_v11 = vpop.eup %581  ;;  %421 = vperm.xlu1 %564, %v580_v7  }
 0x176   : > { %416 = vperm.xlu0 %563, %v582_v11   ;;  %v584_v16 = vpop.eup %583 }
 0x177   : > { %v405_v23 = vadd.f32 1.0, %v584_v16 }
 0x179   : > { %v586_v22 = vpop.eup %585  ;;  %595 = vrcp.f32 %v405_v23 }
 0x17a   : > { %426 = vperm.xlu1 %564, %v586_v22   ;;  %v588_v24 = vpop.eup %587 }
 0x17c   : > { %v590_v25 = vpop.eup %589 }
 0x17d   : > { %v592_v26 = vpop.eup %591 }
 0x17e   : > { %431 = vperm.xlu1 %564, %v588_v24  }
 0x180   : > { %v594_v27 = vpop.eup %593 }
 0x182   : > { %436 = vperm.xlu1 %564, %v590_v25  }
 0x186   : > { %441 = vperm.xlu1 %564, %v592_v26   ;;  %v596_v28 = vpop.eup %595 }
 0x18a   : > { %446 = vperm.xlu1 %564, %v594_v27  }
 0x18e   : > { %451 = vperm.xlu1 %564, %v596_v28  }
 0x1f0   : > { %v422_v29 = vpop.permute.xlu1 %421 }
 0x1f1   : > { %v456_v30 = vmul.f32 %v422_v29, %v662_v5  ;;  %v457_v31 = vmul.f32 %v422_v29, %v664_v6  ;;  %v417_v32 = vpop.permute.xlu0 %416 }
 0x1f2   : > { %v454_v33 = vmul.f32 %v417_v32, %v652_v0  ;;  %v455_v34 = vmul.f32 %v417_v32, %v654_v1 }
 0x1f3   : > { %472 = vst [vmem:[%s796_s7 + $0x10] sm:$0xff] %v456_v30  ;;  %473 = vst [vmem:[%s796_s7 + $0x18] sm:$0xff] %v457_v31 }
 0x1f4   : > { %470 = vst [vmem:[%s796_s7] sm:$0xff] %v454_v33  ;;  %471 = vst [vmem:[%s796_s7 + $0x8] sm:$0xff] %v455_v34 }
 0x1f5   : > { %v427_v35 = vpop.permute.xlu1 %426 }
 0x1f6   : > { %v458_v36 = vmul.f32 %v427_v35, %v656_v2  ;;  %v459_v5 = vmul.f32 %v427_v35, %v660_v4 }
 0x1f8   : > { %474 = vst [vmem:[%s796_s7 + $0x20] sm:$0xff] %v458_v36  ;;  %475 = vst [vmem:[%s796_s7 + $0x28] sm:$0xff] %v459_v5 }
 0x1f9   : > { %v432_v6 = vpop.permute.xlu1 %431 }
 0x1fa   : > { %v460_v0 = vmul.f32 %v432_v6, %v668_v8  ;;  %v461_v1 = vmul.f32 %v432_v6, %v670_v9 }
 0x1fc   : > { %476 = vst [vmem:[%s796_s7 + $0x30] sm:$0xff] %v460_v0  ;;  %477 = vst [vmem:[%s796_s7 + $0x38] sm:$0xff] %v461_v1 }
 0x1fd   : > { %v437_v37 = vpop.permute.xlu1 %436 }
 0x1fe   : > { %v462_v38 = vmul.f32 %v437_v37, %v676_v12  ;;  %v463_v2 = vmul.f32 %v437_v37, %v678_v13 }
 0x200   : > { %478 = vst [vmem:[%s796_s7 + $0x40] sm:$0xff] %v462_v38  ;;  %479 = vst [vmem:[%s796_s7 + $0x48] sm:$0xff] %v463_v2 }
 0x201   : > { %v442_v4 = vpop.permute.xlu1 %441 }
 0x202   : > { %v464_v39 = vmul.f32 %v442_v4, %v680_v14  ;;  %v465_v8 = vmul.f32 %v442_v4, %v682_v15 }
 0x204   : > { %480 = vst [vmem:[%s796_s7 + $0x50] sm:$0xff] %v464_v39  ;;  %481 = vst [vmem:[%s796_s7 + $0x58] sm:$0xff] %v465_v8 }
 0x205   : > { %v447_v9 = vpop.permute.xlu1 %446 }
 0x206   : > { %v466_v40 = vmul.f32 %v447_v9, %v688_v18  ;;  %v467_v41 = vmul.f32 %v447_v9, %v690_v19 }
 0x208   : > { %482 = vst [vmem:[%s796_s7 + $0x60] sm:$0xff] %v466_v40  ;;  %483 = vst [vmem:[%s796_s7 + $0x68] sm:$0xff] %v467_v41 }
 0x209   : > { %v452_v12 = vpop.permute.xlu1 %451 }
 0x20a   : > { %v468_v13 = vmul.f32 %v452_v12, %v692_v20  ;;  %v469_v42 = vmul.f32 %v452_v12, %v694_v21 }
 0x20c   : > { %484 = vst [vmem:[%s796_s7 + $0x70] sm:$0xff] %v468_v13  ;;  %485 = vst [vmem:[%s796_s7 + $0x78] sm:$0xff] %v469_v42 }
 0x20d PF: > { %s15_s18 = sadd.s32 1, %s603_s18  }
 0x20e   : > { %p12_p4 = scmp.ge.s32.totalorder %s15_s18, 4  }
 0x210   :  { %14 = sbr.rel (!%p12_p4) target bundleno = 1 (0x1), region = 70 }

</bundles_post_ra>
